<compile_context>
chip_gen: v7x
topology: tpu7x:2x2x1
jax: 0.10.0
libtpu: 0.0.40
codegen_flags: <defaults>
</compile_context>

<pallas_src>
import jax
import jax.numpy as jnp
from jax.experimental import pallas as pl
from jax.experimental.pallas import tpu as pltpu

K_IN = 784        # input features (28*28); kept UNPADDED in HBM (full-extent last dim)
H = 128           # hidden width
N_OUT = 10        # logits; kept UNPADDED in HBM -> 40 B/row writeback
TB_TARGET = 2048  # batch tile (sweep 1024-4096); ~25 MB VMEM working set fits v7x 64 MiB


def _round_up(x, m):
    return (x + m - 1) // m * m


def _pick_tile(b):
    """Small B -> one 16-row-aligned block (bf16 sublane packing); larger B ->
    tile sized for >= 4 grid steps (v7x has 2 TensorCores; also amortizes the
    ~0.35us per-grid-step overhead), capped at TB_TARGET."""
    if b <= 256:
        return _round_up(b, 16)
    return min(TB_TARGET, _round_up(pl.cdiv(b, 4), 256))


def mlp_kernel(x_ref, w1_ref, b1_ref, w2_ref, b2_ref, w3_ref, b3_ref, o_ref):
    # f32 -> bf16 cast happens here (VPU work hidden under the input DMA)
    # instead of as a separate pad+cast XLA pass over x in HBM.
    x = x_ref[...].astype(jnp.bfloat16)
    # Layer 1: (TB, 784)bf16 @ (784, 128)bf16 -> f32 acc, + bias, ReLU
    h1 = jnp.dot(x, w1_ref[...], preferred_element_type=jnp.float32)
    h1 = jnp.maximum(h1 + b1_ref[...], 0.0)
    # Layer 2: (TB, 128) @ (128, 128)
    h2 = jnp.dot(h1.astype(jnp.bfloat16), w2_ref[...],
                 preferred_element_type=jnp.float32)
    h2 = jnp.maximum(h2 + b2_ref[...], 0.0)
    # Layer 3: narrow N=10 (masked vst to VMEM, but HBM writeback is only 40 B/row;
    # kernel is DMA-bound so the masked store is not the binding slot).
    out = jnp.dot(h2.astype(jnp.bfloat16), w3_ref[...],
                  preferred_element_type=jnp.float32)
    o_ref[...] = (out + b3_ref[...]).astype(o_ref.dtype)


def prepare_params(params):
    """One-time conversion OUTSIDE the per-step forward: weights -> bf16
    (halves resident-weight HBM traffic), biases stay f32 (1, out)."""
    w1, b1, w2, b2, w3, b3 = params
    return (w1.astype(jnp.bfloat16), b1.astype(jnp.float32),
            w2.astype(jnp.bfloat16), b2.astype(jnp.float32),
            w3.astype(jnp.bfloat16), b3.astype(jnp.float32))


@jax.jit
def mlp_forward(x_nchw, prepared_params):
    """x_nchw: (B, 1, 28, 28) float32. Returns (B, 10) float32 logits."""
    w1, b1, w2, b2, w3, b3 = prepared_params
    B = x_nchw.shape[0]
    x = x_nchw.reshape(B, -1)              # (B, 784), metadata-only reshape

    TB = _pick_tile(B)
    B_pad = _round_up(B, TB)
    if B_pad != B:                         # only for tiny / ragged batches
        x = jnp.pad(x, ((0, B_pad - B), (0, 0)))
    grid = (B_pad // TB,)

    # Weights / biases: full blocks, same block index every step -> VMEM resident.
    resident = lambda shape: pl.BlockSpec(shape, lambda i: tuple(0 for _ in shape))

    flops = 2 * B_pad * (K_IN * H + H * H + H * N_OUT)
    bytes_accessed = (x.size * x.dtype.itemsize
                      + (w1.size + w2.size + w3.size) * 2
                      + (b1.size + b2.size + b3.size) * 4
                      + B_pad * N_OUT * 4)

    out = pl.pallas_call(
        mlp_kernel,
        out_shape=jax.ShapeDtypeStruct((B_pad, N_OUT), jnp.float32),
        grid=grid,
        in_specs=[
            pl.BlockSpec((TB, K_IN), lambda i: (i, 0)),   # x: tiled over batch, 784 = full extent
            resident((K_IN, H)), resident((1, H)),        # W1, b1
            resident((H, H)),    resident((1, H)),        # W2, b2
            resident((H, N_OUT)), resident((1, N_OUT)),   # W3, b3 (narrow, unpadded)
        ],
        out_specs=pl.BlockSpec((TB, N_OUT), lambda i: (i, 0)),
        compiler_params=pltpu.CompilerParams(
            dimension_semantics=("parallel",),
            vmem_limit_bytes=48 << 20,
        ),
        cost_estimate=pl.CostEstimate(
            flops=flops, transcendentals=0, bytes_accessed=bytes_accessed),
    )(x, w1, b1, w2, b2, w3, b3)

    # Padded batch rows contain relu(bias)-derived garbage -> keep the row slice.
    return out[:B] if B_pad != B else out


def init_params(key):
    """Deterministic init matching nn.Linear's U(-1/sqrt(fan_in), 1/sqrt(fan_in)),
    stored as (in, out) weights and (1, out) biases."""
    dims = [(K_IN, H), (H, H), (H, N_OUT)]
    params = []
    for d_in, d_out in dims:
        key, kw, kb = jax.random.split(key, 3)
        bound = 1.0 / jnp.sqrt(jnp.float32(d_in))
        w = jax.random.uniform(kw, (d_in, d_out), jnp.float32, -bound, bound)
        b = jax.random.uniform(kb, (1, d_out), jnp.float32, -bound, bound)
        params += [w, b]
    return tuple(params)


def reference_forward(x_nchw, params):
    """Pure-JAX reference mirroring the kernel's bf16-operand / f32-accumulate math."""
    w1, b1, w2, b2, w3, b3 = params
    x = x_nchw.reshape(x_nchw.shape[0], -1)
    h = jnp.dot(x.astype(jnp.bfloat16), w1.astype(jnp.bfloat16),
                preferred_element_type=jnp.float32)
    h = jnp.maximum(h + b1, 0.0)
    h = jnp.dot(h.astype(jnp.bfloat16), w2.astype(jnp.bfloat16),
                preferred_element_type=jnp.float32)
    h = jnp.maximum(h + b2, 0.0)
    h = jnp.dot(h.astype(jnp.bfloat16), w3.astype(jnp.bfloat16),
                preferred_element_type=jnp.float32)
    return h + b3


if __name__ == "__main__":
    key = jax.random.PRNGKey(0)
    key, kx = jax.random.split(key)
    # Small, shape-consistent input: batch=2, NCHW MNIST-like image (1, 28, 28) -> 784 features
    x = jax.random.normal(kx, (2, 1, 28, 28), dtype=jnp.float32)
    params = init_params(key)
    prepped = prepare_params(params)   # one-time bf16 weight conversion (not per call)

    out = mlp_forward(x, prepped)
    out = jax.block_until_ready(out)

    ref = reference_forward(x, params)
    assert out.shape == (2, 10)
    assert jnp.allclose(out, ref, atol=2e-3, rtol=2e-3), (
        float(jnp.max(jnp.abs(out - ref))))

    print("KERNEL_OK")
</pallas_src>

<mosaic_0001>
module attributes {stable_mosaic.version = 11 : i64} {
  func.func @mlp_kernel(%arg0: i32, %arg1: memref<16x784xf32, #tpu.memory_space<vmem>>, %arg2: memref<784x128xbf16, #tpu.memory_space<vmem>>, %arg3: memref<1x128xf32, #tpu.memory_space<vmem>>, %arg4: memref<128x128xbf16, #tpu.memory_space<vmem>>, %arg5: memref<1x128xf32, #tpu.memory_space<vmem>>, %arg6: memref<128x10xbf16, #tpu.memory_space<vmem>>, %arg7: memref<1x10xf32, #tpu.memory_space<vmem>>, %arg8: memref<16x10xf32, #tpu.memory_space<vmem>>) attributes {dimension_semantics = [#tpu.dimension_semantics<parallel>], iteration_bounds = array<i64: 1>, scalar_prefetch = 0 : i64, scratch_operands = 0 : i64, tpu.core_type = #tpu.core_type<tc>, window_params = [{transform_indices = @transform_0, window_bounds = array<i64: 16, 784>}, {pipeline_mode = #tpu.pipeline_mode<synchronous>, transform_indices = @transform_1, window_bounds = array<i64: 784, 128>}, {pipeline_mode = #tpu.pipeline_mode<synchronous>, transform_indices = @transform_2, window_bounds = array<i64: 1, 128>}, {pipeline_mode = #tpu.pipeline_mode<synchronous>, transform_indices = @transform_3, window_bounds = array<i64: 128, 128>}, {pipeline_mode = #tpu.pipeline_mode<synchronous>, transform_indices = @transform_4, window_bounds = array<i64: 1, 128>}, {pipeline_mode = #tpu.pipeline_mode<synchronous>, transform_indices = @transform_5, window_bounds = array<i64: 128, 10>}, {pipeline_mode = #tpu.pipeline_mode<synchronous>, transform_indices = @transform_6, window_bounds = array<i64: 1, 10>}, {transform_indices = @transform_7, window_bounds = array<i64: 16, 10>}]} {
    %c0 = arith.constant 0 : index
    %c0_0 = arith.constant 0 : index
    %0 = vector.load %arg1[%c0, %c0_0] : memref<16x784xf32, #tpu.memory_space<vmem>>, vector<16x784xf32>
    %1 = arith.truncf %0 : vector<16x784xf32> to vector<16x784xbf16>
    %c0_1 = arith.constant 0 : index
    %c0_2 = arith.constant 0 : index
    %2 = vector.load %arg2[%c0_1, %c0_2] : memref<784x128xbf16, #tpu.memory_space<vmem>>, vector<784x128xbf16>
    %cst = arith.constant dense<0.000000e+00> : vector<16x128xf32>
    %3 = tpu.matmul %1, %2, %cst {dimension_numbers = #tpu.dot_dimension_numbers<[1], [0], [0], [1], [0, 0, 1, 1], [], []>} : vector<16x784xbf16>, vector<784x128xbf16>, vector<16x128xf32> -> vector<16x128xf32>
    %c0_3 = arith.constant 0 : index
    %c0_4 = arith.constant 0 : index
    %4 = vector.load %arg3[%c0_3, %c0_4] : memref<1x128xf32, #tpu.memory_space<vmem>>, vector<1x128xf32>
    %5 = vector.broadcast %4 : vector<1x128xf32> to vector<16x128xf32>
    %6 = arith.addf %3, %5 : vector<16x128xf32>
    %cst_5 = arith.constant 0.000000e+00 : f32
    %7 = vector.broadcast %cst_5 : f32 to vector<16x128xf32>
    %8 = arith.maximumf %6, %7 : vector<16x128xf32>
    %9 = arith.truncf %8 : vector<16x128xf32> to vector<16x128xbf16>
    %c0_6 = arith.constant 0 : index
    %c0_7 = arith.constant 0 : index
    %10 = vector.load %arg4[%c0_6, %c0_7] : memref<128x128xbf16, #tpu.memory_space<vmem>>, vector<128x128xbf16>
    %cst_8 = arith.constant dense<0.000000e+00> : vector<16x128xf32>
    %11 = tpu.matmul %9, %10, %cst_8 {dimension_numbers = #tpu.dot_dimension_numbers<[1], [0], [0], [1], [0, 0, 1, 1], [], []>} : vector<16x128xbf16>, vector<128x128xbf16>, vector<16x128xf32> -> vector<16x128xf32>
    %c0_9 = arith.constant 0 : index
    %c0_10 = arith.constant 0 : index
    %12 = vector.load %arg5[%c0_9, %c0_10] : memref<1x128xf32, #tpu.memory_space<vmem>>, vector<1x128xf32>
    %13 = vector.broadcast %12 : vector<1x128xf32> to vector<16x128xf32>
    %14 = arith.addf %11, %13 : vector<16x128xf32>
    %cst_11 = arith.constant 0.000000e+00 : f32
    %15 = vector.broadcast %cst_11 : f32 to vector<16x128xf32>
    %16 = arith.maximumf %14, %15 : vector<16x128xf32>
    %17 = arith.truncf %16 : vector<16x128xf32> to vector<16x128xbf16>
    %c0_12 = arith.constant 0 : index
    %c0_13 = arith.constant 0 : index
    %18 = vector.load %arg6[%c0_12, %c0_13] : memref<128x10xbf16, #tpu.memory_space<vmem>>, vector<128x10xbf16>
    %cst_14 = arith.constant dense<0.000000e+00> : vector<16x10xf32>
    %19 = tpu.matmul %17, %18, %cst_14 {dimension_numbers = #tpu.dot_dimension_numbers<[1], [0], [0], [1], [0, 0, 1, 1], [], []>} : vector<16x128xbf16>, vector<128x10xbf16>, vector<16x10xf32> -> vector<16x10xf32>
    %c0_15 = arith.constant 0 : index
    %c0_16 = arith.constant 0 : index
    %20 = vector.load %arg7[%c0_15, %c0_16] : memref<1x10xf32, #tpu.memory_space<vmem>>, vector<1x10xf32>
    %21 = vector.broadcast %20 : vector<1x10xf32> to vector<16x10xf32>
    %22 = arith.addf %19, %21 : vector<16x10xf32>
    %c0_17 = arith.constant 0 : index
    %c0_18 = arith.constant 0 : index
    %23 = vector.load %arg8[%c0_17, %c0_18] : memref<16x10xf32, #tpu.memory_space<vmem>>, vector<16x10xf32>
    tpu.vector_store %arg8[%c0_17, %c0_18], %22 {strides = array<i32>} : memref<16x10xf32, #tpu.memory_space<vmem>>, vector<16x10xf32>,
    return
  }
  func.func @transform_0(%arg0: i32) -> (i32, i32) {
    %c0_i32 = arith.constant 0 : i32
    %c0_i32_0 = arith.constant 0 : i32
    return %arg0, %c0_i32 : i32, i32
  }
  func.func @transform_1(%arg0: i32) -> (i32, i32) {
    %c0_i32 = arith.constant 0 : i32
    %c0_i32_0 = arith.constant 0 : i32
    %c0_i32_1 = arith.constant 0 : i32
    return %c0_i32, %c0_i32_0 : i32, i32
  }
  func.func @transform_2(%arg0: i32) -> (i32, i32) {
    %c0_i32 = arith.constant 0 : i32
    %c0_i32_0 = arith.constant 0 : i32
    %c0_i32_1 = arith.constant 0 : i32
    return %c0_i32, %c0_i32_0 : i32, i32
  }
  func.func @transform_3(%arg0: i32) -> (i32, i32) {
    %c0_i32 = arith.constant 0 : i32
    %c0_i32_0 = arith.constant 0 : i32
    %c0_i32_1 = arith.constant 0 : i32
    return %c0_i32, %c0_i32_0 : i32, i32
  }
  func.func @transform_4(%arg0: i32) -> (i32, i32) {
    %c0_i32 = arith.constant 0 : i32
    %c0_i32_0 = arith.constant 0 : i32
    %c0_i32_1 = arith.constant 0 : i32
    return %c0_i32, %c0_i32_0 : i32, i32
  }
  func.func @transform_5(%arg0: i32) -> (i32, i32) {
    %c0_i32 = arith.constant 0 : i32
    %c0_i32_0 = arith.constant 0 : i32
    %c0_i32_1 = arith.constant 0 : i32
    return %c0_i32, %c0_i32_0 : i32, i32
  }
  func.func @transform_6(%arg0: i32) -> (i32, i32) {
    %c0_i32 = arith.constant 0 : i32
    %c0_i32_0 = arith.constant 0 : i32
    %c0_i32_1 = arith.constant 0 : i32
    return %c0_i32, %c0_i32_0 : i32, i32
  }
  func.func @transform_7(%arg0: i32) -> (i32, i32) {
    %c0_i32 = arith.constant 0 : i32
    %c0_i32_0 = arith.constant 0 : i32
    return %arg0, %c0_i32 : i32, i32
  }
}

</mosaic_0001>

<bundles_post_ra>
// kernel: mlp_forward.1
= control target key start
LH: loop header
LB: loop body
LE: loop exit
PB: predicated region body
PF: predicated region fallthrough
CT: control target
= control target key end

     0   :  { %12 = vsyncpa [#allocation3], 0  ;;  %s1162_s24 = smov [#allocation2]   ;;  %s1470_s0 = inlined_call_operand.vmem [shape: f32[16,784], index: 0, kind: input, shape index: {}]   ;;  %s1471_s1 = inlined_call_operand.vmem [shape: bf16[784,128], index: 1, kind: input, shape index: {}]   ;;  %s1472_s2 = inlined_call_operand.vmem [shape: f32[1,128], index: 2, kind: input, shape index: {}]   ;;  %s1473_s3 = inlined_call_operand.hbm [shape: bf16[128,128], index: 3, kind: input, shape index: {}]   ;;  %s1474_s4 = inlined_call_operand.vmem [shape: f32[1,128], index: 4, kind: input, shape index: {}]   ;;  %s1475_s5 = inlined_call_operand.vmem [shape: bf16[128,10], index: 5, kind: input, shape index: {}]   ;;  %s1476_s6 = inlined_call_operand.vmem [shape: f32[1,10], index: 6, kind: input, shape index: {}]   ;;  %s1477_s7 = inlined_call_operand.vmem [shape: f32[16,10], index: 7, kind: output, shape index: {}]  }
   0x1   :  { %s24_s25 = sshll.u32 %s1162_s24, 4  ;;  %s1138_s28 = scalar_lea.hbm %s1473_s3, 1024  ;;  %s25_s25 = int_to_ptr.vmem [resolvable:$true] %s24_s25 }
   0x2   :  { %p1139_p0 = scmp.ne.s32.totalorder %s1473_s3, %s1138_s28  ;;  %p1142_p1 = scmp.lt.u32.totalorder %s1138_s28, %s1473_s3 }
   0x4   :  { %p1144_p2 = pnand %p1142_p1, %p1139_p0 }
   0x6   :  { %1147 = shalt.err (!%p1144_p2)
}
   0x7   :  { %s1148_s10 = scalar_lea.vmem %s25_s25, 1024  ;;  %p1153_p4 = scmp.lt.s32.totalorder %s25_s25, %s25_s25 }
   0x8   :  { %p1149_p3 = scmp.ne.s32.totalorder %s25_s25, %s1148_s10  ;;  %p1154_p5 = scmp.lt.s32.totalorder %s1148_s10, %s1148_s10 }
   0xa   :  { %p1155_p6 = por %p1154_p5, %p1153_p4 }
   0xc   :  { %p1156_p7 = pnand %p1155_p6, %p1149_p3 }
   0xe   :  { %1159 = shalt.err (!%p1156_p7)
}
   0xf   :  { %s1163_s11 = smov 64   ;;  %s1164_s12 = smov 4  }
  0x10   :  { %30 = dma.hbm_to_vmem [thread:$0]  %s1473_s3, 1024, %s25_s25, [#allocation3], %s1163_s11, %s1163_s11, %s1164_s12  }
  0x11   :  { %1160 = dma.done.wait [#allocation3], 1024  }
  0x12   :  { %1161 = vsyncadd [#allocation3], 4294966272  ;;  %v1073_v0 = vld [vmem:[%s1471_s1 + $0x40] sm:$0xff]   ;;  %v1077_v4 = vld [vmem:[%s1471_s1 + $0x48] sm:$0xff]   ;;  %v1165_v43 = vmov 0.0   ;;  %vm1166_vm0 = vmmov 0  }
  0x13   :  { %v1074_v1 = vld [vmem:[%s1471_s1] sm:$0xff]   ;;  %936 = vmatprep.subr.bf16.mxu0 %v1073_v0  ;;  %v1078_v5 = vld [vmem:[%s1471_s1 + $0x8] sm:$0xff]   ;;  %v1081_v8 = vld [vmem:[%s1471_s1 + $0x50] sm:$0xff]   ;;  %vm461_vm1 = vcmask 130048   ;;  %vm859_vm2 = vcmask 80896  }
  0x14   :  { %v1075_v2 = vld [vmem:[%s1471_s1 + $0xc0] sm:$0xff]   ;;  %937 = vmatpush3.bf16.msra.mxu0 %v1074_v1  ;;  %v1079_v6 = vld [vmem:[%s1471_s1 + $0xc8] sm:$0xff]   ;;  %v1082_v9 = vld [vmem:[%s1471_s1 + $0x10] sm:$0xff]  }
  0x15   :  { %v1076_v3 = vld [vmem:[%s1471_s1 + $0x80] sm:$0xff]   ;;  %958 = vmatprep.subr.bf16.mxu1 %v1075_v2  ;;  %938 = vmatprep.subr.bf16.mxu0 %v1077_v4  ;;  %v1080_v7 = vld [vmem:[%s1471_s1 + $0x88] sm:$0xff]   ;;  %v1083_v10 = vld [vmem:[%s1471_s1 + $0xd0] sm:$0xff]  }
  0x16   :  { %959 = vmatpush3.bf16.msra.mxu1 %v1076_v3  ;;  %v1084_v11 = vld [vmem:[%s1471_s1 + $0x90] sm:$0xff]   ;;  %v1085_v12 = vld [vmem:[%s1471_s1 + $0x58] sm:$0xff]   ;;  %v1089_v16 = vld [vmem:[%s1471_s1 + $0x60] sm:$0xff]  }
  0x17   :  { %960 = vmatprep.subr.bf16.mxu1 %v1079_v6  ;;  %v1086_v13 = vld [vmem:[%s1471_s1 + $0x18] sm:$0xff]   ;;  %v1090_v17 = vld [vmem:[%s1471_s1 + $0x20] sm:$0xff]   ;;  %v1093_v20 = vld [vmem:[%s1471_s1 + $0x68] sm:$0xff]  }
  0x18   :  { %939 = vmatpush3.bf16.msra.mxu0 %v1078_v5  ;;  %v1087_v14 = vld [vmem:[%s1471_s1 + $0xd8] sm:$0xff]   ;;  %v1091_v18 = vld [vmem:[%s1471_s1 + $0xe0] sm:$0xff]   ;;  %v1094_v21 = vld [vmem:[%s1471_s1 + $0x28] sm:$0xff]  }
  0x19   :  { %940 = vmatprep.subr.bf16.mxu0 %v1081_v8  ;;  %v1088_v15 = vld [vmem:[%s1471_s1 + $0x98] sm:$0xff]   ;;  %v1092_v19 = vld [vmem:[%s1471_s1 + $0xa0] sm:$0xff]   ;;  %v1095_v22 = vld [vmem:[%s1471_s1 + $0xe8] sm:$0xff]  }
  0x1a   :  { %961 = vmatpush3.bf16.msra.mxu1 %v1080_v7  ;;  %v1096_v23 = vld [vmem:[%s1471_s1 + $0xa8] sm:$0xff]   ;;  %v1097_v24 = vld [vmem:[%s1471_s1 + $0x70] sm:$0xff]   ;;  %v1101_v28 = vld [vmem:[%s1471_s1 + $0x78] sm:$0xff]  }
  0x1b   :  { %962 = vmatprep.subr.bf16.mxu1 %v1083_v10  ;;  %v1098_v25 = vld [vmem:[%s1471_s1 + $0x30] sm:$0xff]   ;;  %v1102_v29 = vld [vmem:[%s1471_s1 + $0x38] sm:$0xff]   ;;  %v42_v31 = vld [vmem:[%s1470_s0 + $0x8] sm:$0xff] }
  0x1c   :  { %941 = vmatpush3.bf16.msra.mxu0 %v1082_v9  ;;  %v1099_v26 = vld [vmem:[%s1471_s1 + $0xf0] sm:$0xff]   ;;  %v1103_v30 = vld [vmem:[%s1471_s1 + $0xf8] sm:$0xff]   ;;  %v49_v32 = vld [vmem:[%s1470_s0 + $0x40] sm:$0xff] }
  0x1d   :  { %942 = vmatprep.subr.bf16.mxu0 %v1085_v12  ;;  %v1100_v27 = vld [vmem:[%s1471_s1 + $0xb0] sm:$0xff]   ;;  %v56_v33 = vpack.c.bf16 %v49_v32, %v42_v31  ;;  %v1104_v34 = vld [vmem:[%s1471_s1 + $0xb8] sm:$0xff]   ;;  %v41_v35 = vld [vmem:[%s1470_s0] sm:$0xff] }
  0x1e   :  { %963 = vmatpush3.bf16.msra.mxu1 %v1084_v11  ;;  %v48_v36 = vld [vmem:[%s1470_s0 + $0x38] sm:$0xff]  ;;  %v1105_v38 = vld [vmem:[%s1471_s1 + $0x140] sm:$0xff]   ;;  %v51_v40 = vld [vmem:[%s1470_s0 + $0x50] sm:$0xff] }
  0x1f   :  { %964 = vmatprep.subr.bf16.mxu1 %v1087_v14  ;;  %497 = vmatprep.mubr.bf16.mxu0 %v56_v33  ;;  %v55_v37 = vpack.c.bf16 %v48_v36, %v41_v35  ;;  %v44_v39 = vld [vmem:[%s1470_s0 + $0x18] sm:$0xff]  ;;  %v1106_v42 = vld [vmem:[%s1471_s1 + $0x100] sm:$0xff]   ;;  %v43_v44 = vld [vmem:[%s1470_s0 + $0x10] sm:$0xff] }
  0x20   :  { %943 = vmatpush3.bf16.msra.mxu0 %v1086_v13  ;;  %v58_v41 = vpack.c.bf16 %v51_v40, %v44_v39  ;;  %v50_v45 = vld [vmem:[%s1470_s0 + $0x48] sm:$0xff]  ;;  %v1109_v49 = vld [vmem:[%s1471_s1 + $0x150] sm:$0xff]   ;;  %v1111_v51 = vld [vmem:[%s1471_s1 + $0x158] sm:$0xff]  }
  0x21   :  { %944 = vmatprep.subr.bf16.mxu0 %v1089_v16  ;;  %v57_v46 = vpack.c.bf16 %v50_v45, %v43_v44  ;;  %v1107_v47 = vld [vmem:[%s1471_s1 + $0x148] sm:$0xff]   ;;  %v1110_v50 = vld [vmem:[%s1471_s1 + $0x110] sm:$0xff]   ;;  %v1112_v52 = vld [vmem:[%s1471_s1 + $0x118] sm:$0xff]  }
  0x22   :  { %965 = vmatpush3.bf16.msra.mxu1 %v1088_v15  ;;  %538 = vmatprep.mubr.bf16.mxu1 %v58_v41  ;;  %v1108_v48 = vld [vmem:[%s1471_s1 + $0x108] sm:$0xff]   ;;  %v1113_v53 = vld [vmem:[%s1471_s1 + $0x160] sm:$0xff]   ;;  %v1117_v59 = vld [vmem:[%s1471_s1 + $0x170] sm:$0xff]  }
  0x23   :  { %966 = vmatprep.subr.bf16.mxu1 %v1091_v18  ;;  %v1114_v54 = vld [vmem:[%s1471_s1 + $0x120] sm:$0xff]   ;;  %v1115_v55 = vld [vmem:[%s1471_s1 + $0x168] sm:$0xff]   ;;  %v47_v62 = vld [vmem:[%s1470_s0 + $0x30] sm:$0xff] }
  0x24   :  { %945 = vmatpush3.bf16.msra.mxu0 %v1090_v17  ;;  %v1121_v56 = vld [vmem:[%s1471_s1 + $0x180] sm:$0xff]   ;;  %v46_v57 = vld [vmem:[%s1470_s0 + $0x28] sm:$0xff]  ;;  %v1118_v1 = vld [vmem:[%s1471_s1 + $0x130] sm:$0xff]  }
  0x25   :  { %946 = vmatprep.subr.bf16.mxu0 %v1093_v20  ;;  %v1116_v58 = vld [vmem:[%s1471_s1 + $0x128] sm:$0xff]   ;;  %v53_v60 = vld [vmem:[%s1470_s0 + $0x60] sm:$0xff]  ;;  %v1119_v2 = vld [vmem:[%s1471_s1 + $0x178] sm:$0xff]  }
  0x26   :  { %967 = vmatpush3.bf16.msra.mxu1 %v1092_v19  ;;  %v60_v61 = vpack.c.bf16 %v53_v60, %v46_v57  ;;  %v54_v63 = vld [vmem:[%s1470_s0 + $0x68] sm:$0xff]  ;;  %v1120_v3 = vld [vmem:[%s1471_s1 + $0x138] sm:$0xff]   ;;  %v45_v4 = vld [vmem:[%s1470_s0 + $0x20] sm:$0xff] }
  0x27   :  { %968 = vmatprep.subr.bf16.mxu1 %v1095_v22  ;;  %v61_v0 = vpack.c.bf16 %v54_v63, %v47_v62  ;;  %v52_v5 = vld [vmem:[%s1470_s0 + $0x58] sm:$0xff]  ;;  %v1122_v7 = vld [vmem:[#allocation2] sm:$0xff]   ;;  %v1123_v8 = vld [vmem:[#allocation2 + $0x8] sm:$0xff]  }
  0x28   :  { %947 = vmatpush3.bf16.msra.mxu0 %v1094_v21  ;;  %v59_v6 = vpack.c.bf16 %v52_v5, %v45_v4  ;;  %v1124_v9 = vld [vmem:[#allocation2 + $0x10] sm:$0xff]   ;;  %v1125_v10 = vld [vmem:[#allocation2 + $0x18] sm:$0xff]   ;;  %v1126_v11 = vld [vmem:[#allocation2 + $0x20] sm:$0xff]  }
  0x29   :  { %948 = vmatprep.subr.bf16.mxu0 %v1097_v24  ;;  %v1127_v12 = vld [vmem:[#allocation2 + $0x28] sm:$0xff]   ;;  %v1128_v13 = vld [vmem:[#allocation2 + $0x30] sm:$0xff]   ;;  %v1129_v14 = vld [vmem:[#allocation2 + $0x38] sm:$0xff]  }
  0x2a   :  { %969 = vmatpush3.bf16.msra.mxu1 %v1096_v23  ;;  %v1130_v15 = vld [vmem:[%s1475_s5] sm:$0xff]   ;;  %v1131_v16 = vld [vmem:[%s1475_s5 + $0x8] sm:$0xff]   ;;  %v1132_v17 = vld [vmem:[%s1475_s5 + $0x10] sm:$0xff]  }
  0x2b   :  { %970 = vmatprep.subr.bf16.mxu1 %v1099_v26  ;;  %v1133_v18 = vld [vmem:[%s1475_s5 + $0x18] sm:$0xff]   ;;  %v1134_v19 = vld [vmem:[%s1475_s5 + $0x20] sm:$0xff]   ;;  %v1135_v20 = vld [vmem:[%s1475_s5 + $0x28] sm:$0xff]  }
  0x2c   :  { %949 = vmatpush3.bf16.msra.mxu0 %v1098_v25  ;;  %v867_v22 = vld [vmem:[%s1472_s2] ss:$0 sm:$0xff]  ;;  %v1137_v57 = vld [vmem:[%s1475_s5 + $0x38] sm:$0xff]  }
  0x2d   :  { %950 = vmatprep.subr.bf16.mxu0 %v1101_v28 }
  0x2e   :  { %971 = vmatpush3.bf16.msra.mxu1 %v1100_v27 }
  0x2f   :  { %972 = vmatprep.subr.bf16.mxu1 %v1103_v30 }
  0x30   :  { %951 = vmatpush3.bf16.msra.mxu0 %v1102_v29 }
  0x31   :  { %980 = vmatprep.subr.bf16.mxu0 %v1105_v38 }
  0x32   :  { %973 = vmatpush3.bf16.msra.mxu1 %v1104_v34 }
  0x33   :  { %1022 = vmatprep.subr.bf16.mxu1 %v1165_v43  ;;  %498 = vmatmul.mubr.bf16.vlgmr.msra.gmra.mrb[0].mxu0 %v55_v37 }
  0x34   :  { %981 = vmatpush3.bf16.msra.mxu0 %v1106_v42  ;;  %579 = vmatprep.mubr.bf16.mxu0 %v60_v61 }
  0x35   :  { %539 = vmatmul.mubr.bf16.vlgmr.msra.gmra.mrb[0].mxu1 %v57_v46  ;;  %982 = vmatprep.subr.bf16.mxu0 %v1107_v47 }
  0x36   :  { %1024 = vmatprep.mubr.msk.bf16.mxu1 %vm1166_vm0, %v1165_v43  ;;  %1023 = vmatpush3.bf16.msra.mxu1 %v1121_v56  ;;  %v1136_v56 = vld [vmem:[%s1475_s5 + $0x30] sm:$0xff]  }
  0x37   :  { %1028 = vmatprep.subr.bf16.mxu1 %v1165_v43 }
  0x38   :  { %983 = vmatpush3.bf16.msra.mxu0 %v1108_v48 }
  0x39   :  { %984 = vmatprep.subr.bf16.mxu0 %v1109_v49 }
  0x3c   :  { %985 = vmatpush3.bf16.msra.mxu0 %v1110_v50 }
  0x3d   :  { %986 = vmatprep.subr.bf16.mxu0 %v1111_v51  ;;  %1025 = vmatmul.mubr.msk.bf16.vlgmr.msra.gmra.mrb[4].mxu1 %vm461_vm1, %v61_v0 }
  0x3e   :  { %1044 = vmatprep.mubr.msk.bf16.mxu1 %vm1166_vm0, %v1165_v43  ;;  %1029 = vmatpush3.bf16.msra.mxu1 %v1122_v7 }
  0x3f   :  { %1030 = vmatprep.subr.bf16.mxu1 %v1165_v43 }
  0x40   :  { %987 = vmatpush3.bf16.msra.mxu0 %v1112_v52 }
  0x41   :  { %988 = vmatprep.subr.bf16.mxu0 %v1113_v53 }
  0x42   :  { %1031 = vmatpush3.bf16.msra.mxu1 %v1123_v8 }
  0x43   :  { %1032 = vmatprep.subr.bf16.mxu1 %v1165_v43 }
  0x44   :  { %989 = vmatpush3.bf16.msra.mxu0 %v1114_v54 }
  0x45   :  { %990 = vmatprep.subr.bf16.mxu0 %v1115_v55 }
  0x46   :  { %1033 = vmatpush3.bf16.msra.mxu1 %v1124_v9 }
  0x47   :  { %1034 = vmatprep.subr.bf16.mxu1 %v1165_v43 }
  0x48   :  { %991 = vmatpush3.bf16.msra.mxu0 %v1116_v58  ;;  %v918_v58 = vld [vmem:[%s1474_s4] ss:$0 sm:$0xff] }
  0x49   :  { %992 = vmatprep.subr.bf16.mxu0 %v1117_v59 }
  0x4a   :  { %1035 = vmatpush3.bf16.msra.mxu1 %v1125_v10 }
  0x4b   :  { %1036 = vmatprep.subr.bf16.mxu1 %v1165_v43 }
  0x4c   :  { %993 = vmatpush3.bf16.msra.mxu0 %v1118_v1 }
  0x4d   :  { %994 = vmatprep.subr.bf16.mxu0 %v1119_v2 }
  0x4e   :  { %1037 = vmatpush3.bf16.msra.mxu1 %v1126_v11 }
  0x4f   :  { %1038 = vmatprep.subr.bf16.mxu1 %v1165_v43 }
  0x50   :  { %995 = vmatpush3.bf16.msra.mxu0 %v1120_v3 }
  0x51   :  { %1048 = vmatprep.subr.bf16.mxu0 %v1165_v43 }
  0x52   :  { %1039 = vmatpush3.bf16.msra.mxu1 %v1127_v12 }
  0x53   :  { %580 = vmatmul.mubr.bf16.vlgmr.msra.gmra.mrb[4].mxu0 %v59_v6  ;;  %1040 = vmatprep.subr.bf16.mxu1 %v1165_v43 }
  0x54   :  { %1064 = vmatprep.mubr.msk.bf16.mxu0 %vm1166_vm0, %v1165_v43  ;;  %1049 = vmatpush3.bf16.msra.mxu0 %v1130_v15 }
  0x55   :  { %1050 = vmatprep.subr.bf16.mxu0 %v1165_v43 }
  0x56   :  { %1041 = vmatpush3.bf16.msra.mxu1 %v1128_v13 }
  0x57   :  { %1042 = vmatprep.subr.bf16.mxu1 %v1165_v43 }
  0x58   :  { %1051 = vmatpush3.bf16.msra.mxu0 %v1131_v16 }
  0x59   :  { %1052 = vmatprep.subr.bf16.mxu0 %v1165_v43 }
  0x5a   :  { %1043 = vmatpush3.bf16.msra.mxu1 %v1129_v14 }
  0x5c   :  { %1053 = vmatpush3.bf16.msra.mxu0 %v1132_v17 }
  0x5d   :  { %1054 = vmatprep.subr.bf16.mxu0 %v1165_v43 }
  0x60   :  { %1055 = vmatpush3.bf16.msra.mxu0 %v1133_v18 }
  0x61   :  { %1056 = vmatprep.subr.bf16.mxu0 %v1165_v43 }
  0x64   :  { %1057 = vmatpush3.bf16.msra.mxu0 %v1134_v19 }
  0x65   :  { %1058 = vmatprep.subr.bf16.mxu0 %v1165_v43 }
  0x68   :  { %1059 = vmatpush3.bf16.msra.mxu0 %v1135_v20 }
  0x69   :  { %1060 = vmatprep.subr.bf16.mxu0 %v1165_v43 }
  0x6c   :  { %1061 = vmatpush3.bf16.msra.mxu0 %v1136_v56 }
  0x6d   :  { %1062 = vmatprep.subr.bf16.mxu0 %v1165_v43  ;;  %v927_v43 = vld [vmem:[%s1476_s6] ss:$0 sm:$0xff] }
  0x70   :  { %1063 = vmatpush3.bf16.msra.mxu0 %v1137_v57 }
 0x106   :  { %v952_v21 = vpop.f32.mrb[0].mxu0 }
 0x107   :  { %v953_v23 = vpop.f32.mrb[1].mxu0 }
 0x108   :  { %v954_v24 = vadd.f32 %v953_v23, %v952_v21  ;;  %v955_v25 = vpop.f32.mrb[2].mxu0  ;;  %v974_v26 = vpop.f32.mrb[0].mxu1 }
 0x109   :  { %v956_v27 = vpop.f32.mrb[3].mxu0  ;;  %v975_v30 = vpop.f32.mrb[1].mxu1 }
 0x10a   :  { %v500_v28 = vadd.f32 %v954_v24, %v867_v22  ;;  %v957_v29 = vadd.f32 %v956_v27, %v955_v25  ;;  %v976_v31 = vadd.f32 %v975_v30, %v974_v26  ;;  %v977_v32 = vpop.f32.mrb[2].mxu1 }
 0x10b   :  { %v978_v34 = vpop.f32.mrb[3].mxu1 }
 0x10c   :  { %v503_v33 = vadd.f32 %v957_v29, %v867_v22  ;;  %v541_v35 = vadd.f32 %v976_v31, %v500_v28  ;;  %v979_v36 = vadd.f32 %v978_v34, %v977_v32 }
 0x10e   :  { %v544_v37 = vadd.f32 %v979_v36, %v503_v33 }
 0x110   :  { %v622_v38 = vpop.f32.mrb[4].mxu1 }
 0x111   :  { %v1026_v39 = vpop.f32.mrb[5].mxu1 }
 0x112   :  { %v625_v40 = vpop.f32.mrb[6].mxu1 }
 0x113   :  { %v1027_v41 = vpop.f32.mrb[7].mxu1 }
 0x126   :  { %v996_v42 = vpop.f32.mrb[4].mxu0 }
 0x127   :  { %v997_v44 = vpop.f32.mrb[5].mxu0 }
 0x128   :  { %v998_v45 = vadd.f32 %v997_v44, %v996_v42  ;;  %v999_v46 = vpop.f32.mrb[6].mxu0 }
 0x129   :  { %v1000_v47 = vpop.f32.mrb[7].mxu0 }
 0x12a   :  { %v582_v48 = vadd.f32 %v998_v45, %v541_v35  ;;  %v1001_v49 = vadd.f32 %v1000_v47, %v999_v46 }
 0x12c   :  { %v623_v50 = vadd.f32 %v622_v38, %v582_v48  ;;  %v585_v51 = vadd.f32 %v1001_v49, %v544_v37 }
 0x12e   :  { %v626_v52 = vadd.f32 %v625_v40, %v585_v51  ;;  %v629_v53 = vmax.f32 %v623_v50, 0.0 }
 0x130   :  { %v630_v54 = vmax.f32 %v626_v52, 0.0 }
 0x132   :  { %v631_v55 = vpack.c.bf16 %v630_v54, %v629_v53 }
 0x134   :  { %1045 = vmatmul.mubr.bf16.vlgmr.msra.gmra.mrb[8].mxu1 %v631_v55 }
 0x207   :  { %v737_v59 = vpop.f32.mrb[8].mxu1 }
 0x208   :  { %v738_v60 = vadd.f32 %v918_v58, %v737_v59  ;;  %v1046_v61 = vpop.f32.mrb[9].mxu1 }
 0x209   :  { %v740_v62 = vpop.f32.mrb[10].mxu1 }
 0x20a   :  { %v741_v63 = vadd.f32 %v918_v58, %v740_v62  ;;  %v1047_v0 = vpop.f32.mrb[11].mxu1  ;;  %v744_v1 = vmax.f32 %v738_v60, 0.0 }
 0x20c   :  { %v745_v2 = vmax.f32 %v741_v63, 0.0 }
 0x20e   :  { %v746_v3 = vpack.c.bf16 %v745_v2, %v744_v1 }
 0x210   :  { %1065 = vmatmul.mubr.bf16.vlgmr.msra.gmra.mrb[8].mxu0 %v746_v3 }
 0x2e3   :  { %v852_v4 = vpop.f32.mrb[8].mxu0 }
 0x2e4   :  { %v853_v5 = vadd.f32 %v927_v43, %v852_v4  ;;  %v1066_v6 = vpop.f32.mrb[9].mxu0 }
 0x2e5   :  { %v855_v7 = vpop.f32.mrb[10].mxu0 }
 0x2e6   :  { %860 = vst.msk [vmem:[%s1477_s7] sm:$0xff] %vm859_vm2, %v853_v5  ;;  %v856_v8 = vadd.f32 %v927_v43, %v855_v7  ;;  %v1067_v9 = vpop.f32.mrb[11].mxu0 }
 0x2e8   :  { %861 = vst.msk [vmem:[%s1477_s7 + $0x8] sm:$0xff] %vm859_vm2, %v856_v8 }
 0x2e9   :  { %866 = vsyncpa [#allocation3], 1 }

</bundles_post_ra>
